<compile_context>
chip_gen: v6e
topology: v6e:2x2x1
jax: 0.10.0
libtpu: 0.0.40
codegen_flags: <defaults>
</compile_context>

<pallas_src>
import jax
import jax.numpy as jnp
from jax.experimental import pallas as pl
from jax.experimental.pallas import tpu as pltpu

# ----------------------------- configuration ------------------------------------------
BATCH = 2
SEQ   = 8
DIM1  = 64      # GatedAttention dim1 (input feature dim)
DIM2  = 64      # GatedAttention dim2 (output feature dim)

DEFAULT_ROW_TILE = 512   # rows per grid step; >=512 for ~85% of HBM roofline, fits v7x VMEM


def _round_up(n, m):
    return ((n + m - 1) // m) * m


# ------------------------------ Pallas kernel -----------------------------------------
def _gated_attention_kernel(xy_ref, wh_ref, bh_ref, wz_ref, wzxy_ref, bz_ref, o_ref):
    # xy_ref : (TM, 2*DIM1) bf16  = [x | y]           (lane-dense, 128 wide)
    # wh_ref : (2*DIM1, 2*DIM2) bf16 block-diagonal   [[Wx^T, 0], [0, Wy^T]]
    # bh_ref : (1, 2*DIM2) f32    = [bx | by]
    # wz_ref : (1, 2*DIM1) f32    = [wz_x | wz_y]
    # wzxy_ref:(1, 2*DIM1) f32    = [wz_xy | 0]
    # bz_ref : (1, 1) f32 in SMEM (scalar gate bias)
    # o_ref  : (TM, DIM2) bf16
    xy = xy_ref[...]                                                  # (TM, 128) bf16

    # transform_x / transform_y fused into ONE dense 128-wide MXU dot (f32 accumulate),
    # tanh on the EUP.  Dropout is identity in eval mode.
    h = jnp.tanh(
        jnp.dot(xy, wh_ref[...], preferred_element_type=jnp.float32) + bh_ref[...]
    )                                                                 # (TM, 128) f32 = [hx | hy]

    # Gate logit sigma(Wz . [x, y, x*y] + bz) without materializing the 3x-wide concat:
    # one XLU lane-rotation makes [y | x], so x*y is formed as a dense 128-lane product.
    xy32 = xy.astype(jnp.float32)                                     # keep elementwise in f32 (v5e)
    yx32 = pltpu.roll(xy32, shift=DIM1, axis=1)                       # [y | x]
    gate_logit = jnp.sum(
        xy32 * wz_ref[...] + (xy32 * yx32) * wzxy_ref[...],
        axis=-1, keepdims=True,
    ) + bz_ref[0, 0]                                                  # (TM, 1)
    z = jax.nn.sigmoid(gate_logit)                                    # EUP

    # Gating mix: lane-swap h so hy aligns with hx, mix densely, store the first DIM2 lanes.
    h_swap = pltpu.roll(h, shift=DIM2, axis=1)                        # [hy | hx]
    mixed = z * h + (1.0 - z) * h_swap                                # lanes [:DIM2] = z*hx+(1-z)*hy
    o_ref[...] = mixed[:, :DIM2].astype(o_ref.dtype)


def gated_attention_flat(xy, packed, *, tm):
    """xy: (N_pad, 2*DIM1) bf16, N_pad a multiple of tm. Returns (N_pad, DIM2) bf16."""
    n = xy.shape[0]
    grid = (n // tm,)

    cost = pl.CostEstimate(
        flops=2 * n * (2 * DIM1) * (2 * DIM2) + 10 * n * (2 * DIM1),
        transcendentals=n * (2 * DIM2 + 1),
        bytes_accessed=n * (2 * DIM1) * 2 + n * DIM2 * 2
        + (2 * DIM1) * (2 * DIM2) * 2 + (2 * DIM2 + 4 * DIM1 + 1) * 4,
    )

    return pl.pallas_call(
        _gated_attention_kernel,
        out_shape=jax.ShapeDtypeStruct((n, DIM2), jnp.bfloat16),
        grid=grid,
        in_specs=[
            pl.BlockSpec((tm, 2 * DIM1), lambda i: (i, 0)),          # xy tile (pipelined)
            pl.BlockSpec((2 * DIM1, 2 * DIM2), lambda i: (0, 0)),    # block-diag weight (resident)
            pl.BlockSpec((1, 2 * DIM2), lambda i: (0, 0)),           # [bx | by]
            pl.BlockSpec((1, 2 * DIM1), lambda i: (0, 0)),           # [wz_x | wz_y]
            pl.BlockSpec((1, 2 * DIM1), lambda i: (0, 0)),           # [wz_xy | 0]
            pl.BlockSpec(memory_space=pltpu.MemorySpace.SMEM),       # bz scalar
        ],
        out_specs=pl.BlockSpec((tm, DIM2), lambda i: (i, 0)),
        compiler_params=pltpu.CompilerParams(dimension_semantics=("parallel",)),
        cost_estimate=cost,
    )(xy, packed['wh'], packed['bh'], packed['wz'], packed['wzxy'], packed['bz'])


# -------------------------------- JAX glue --------------------------------------------
def init_raw_params(key, scale=0.1):
    """PyTorch-layout parameters: W is (out, in), b is (out,)."""
    k1, k2, k3, k4, k5, k6 = jax.random.split(key, 6)
    return {
        'wx': scale * jax.random.normal(k1, (DIM2, DIM1), jnp.float32),
        'bx': scale * jax.random.normal(k2, (DIM2,), jnp.float32),
        'wy': scale * jax.random.normal(k3, (DIM2, DIM1), jnp.float32),
        'by': scale * jax.random.normal(k4, (DIM2,), jnp.float32),
        'wz': scale * jax.random.normal(k5, (1, 3 * DIM1), jnp.float32),
        'bz': scale * jax.random.normal(k6, (1,), jnp.float32),
    }


def pack_params(raw):
    """Offline re-pack into the lane-dense kernel layout (bf16 matmul weight, f32 rest)."""
    wh = jnp.zeros((2 * DIM1, 2 * DIM2), jnp.float32)
    wh = wh.at[:DIM1, :DIM2].set(raw['wx'].T)                # transform_x
    wh = wh.at[DIM1:, DIM2:].set(raw['wy'].T)                # transform_y
    bh = jnp.concatenate([raw['bx'], raw['by']])[None, :]    # (1, 2*DIM2)

    wz = raw['wz']
    wz_full  = wz[:, 0:2 * DIM1]                                             # [wz_x | wz_y]
    wzxy_pad = jnp.concatenate([wz[:, 2 * DIM1:], jnp.zeros((1, DIM1), jnp.float32)], axis=-1)

    return {
        'wh': wh.astype(jnp.bfloat16),
        'bh': bh.astype(jnp.float32),
        'wz': wz_full.astype(jnp.float32),
        'wzxy': wzxy_pad.astype(jnp.float32),
        'bz': raw['bz'].reshape(1, 1).astype(jnp.float32),
    }


@jax.jit
def gated_attention_forward(x, y, packed):
    """x, y: (..., DIM1) f32 -> out: (..., DIM2) bf16."""
    lead = x.shape[:-1]
    x2 = x.reshape(-1, DIM1)
    y2 = y.reshape(-1, DIM1)
    n = x2.shape[0]

    tm = min(DEFAULT_ROW_TILE, _round_up(n, 16))     # multiple of 16 (bf16 sublane packing)
    n_pad = _round_up(n, tm)

    # Lane-dense bf16 input slab [x | y]; the concat + cast fuse into one XLA pass.
    xy = jnp.concatenate([x2, y2], axis=-1).astype(jnp.bfloat16)
    if n_pad != n:
        xy = jnp.pad(xy, ((0, n_pad - n), (0, 0)))

    out = gated_attention_flat(xy, packed, tm=tm)
    return out[:n].reshape(*lead, DIM2)


def _reference(x, y, raw):
    """Pure-JAX f32 reference of the PyTorch forward (Dropout = identity in eval mode)."""
    hx = jnp.tanh(x @ raw['wx'].T + raw['bx'])
    hy = jnp.tanh(y @ raw['wy'].T + raw['by'])
    cat = jnp.concatenate([x, y, x * y], axis=-1)
    z = jax.nn.sigmoid(cat @ raw['wz'].T + raw['bz'])
    return z * hx + (1.0 - z) * hy


# ---------------------------------- main -----------------------------------------------
if __name__ == "__main__":
    key = jax.random.PRNGKey(0)
    k_par, k_x, k_y = jax.random.split(key, 3)

    raw = init_raw_params(k_par)
    packed = pack_params(raw)

    x = jax.random.normal(k_x, (BATCH, SEQ, DIM1), jnp.float32)
    y = jax.random.normal(k_y, (BATCH, SEQ, DIM1), jnp.float32)

    out = jax.block_until_ready(gated_attention_forward(x, y, packed))

    assert out.shape == (BATCH, SEQ, DIM2), out.shape
    assert out.dtype == jnp.bfloat16, out.dtype
    out_f32 = out.astype(jnp.float32)
    assert bool(jnp.all(jnp.isfinite(out_f32)))

    # Apples-to-apples check: reference fed the same bf16-rounded activations / matmul
    # weights the kernel sees (gate weights & biases stay f32 in both).
    xq = x.astype(jnp.bfloat16).astype(jnp.float32)
    yq = y.astype(jnp.bfloat16).astype(jnp.float32)
    raw_q = dict(raw)
    raw_q['wx'] = raw['wx'].astype(jnp.bfloat16).astype(jnp.float32)
    raw_q['wy'] = raw['wy'].astype(jnp.bfloat16).astype(jnp.float32)
    ref_q = _reference(xq, yq, raw_q)
    err_q = float(jnp.max(jnp.abs(out_f32 - ref_q)))
    assert err_q < 1e-2, err_q

    # Loose sanity check against the pure-f32 module semantics.
    ref_f32 = _reference(x, y, raw)
    err_f32 = float(jnp.max(jnp.abs(out_f32 - ref_f32)))
    assert err_f32 < 5e-2, err_f32

    print("KERNEL_OK")
</pallas_src>

<mosaic_0001>
module attributes {stable_mosaic.version = 11 : i64} {
  func.func @_gated_attention_kernel(%arg0: i32, %arg1: memref<16x128xbf16, #tpu.memory_space<vmem>>, %arg2: memref<128x128xbf16, #tpu.memory_space<vmem>>, %arg3: memref<1x128xf32, #tpu.memory_space<vmem>>, %arg4: memref<1x128xf32, #tpu.memory_space<vmem>>, %arg5: memref<1x128xf32, #tpu.memory_space<vmem>>, %arg6: memref<1x1xf32, #tpu.memory_space<smem>>, %arg7: memref<16x64xbf16, #tpu.memory_space<vmem>>) attributes {dimension_semantics = [#tpu.dimension_semantics<parallel>], iteration_bounds = array<i64: 1>, scalar_prefetch = 0 : i64, scratch_operands = 0 : i64, tpu.core_type = #tpu.core_type<tc>, window_params = [{transform_indices = @transform_0, window_bounds = array<i64: 16, 128>}, {pipeline_mode = #tpu.pipeline_mode<synchronous>, transform_indices = @transform_1, window_bounds = array<i64: 128, 128>}, {pipeline_mode = #tpu.pipeline_mode<synchronous>, transform_indices = @transform_2, window_bounds = array<i64: 1, 128>}, {pipeline_mode = #tpu.pipeline_mode<synchronous>, transform_indices = @transform_3, window_bounds = array<i64: 1, 128>}, {pipeline_mode = #tpu.pipeline_mode<synchronous>, transform_indices = @transform_4, window_bounds = array<i64: 1, 128>}, {transform_indices = @transform_5, window_bounds = array<i64: 1, 1>}, {transform_indices = @transform_6, window_bounds = array<i64: 16, 64>}]} {
    %c0 = arith.constant 0 : index
    %c0_0 = arith.constant 0 : index
    %0 = vector.load %arg1[%c0, %c0_0] : memref<16x128xbf16, #tpu.memory_space<vmem>>, vector<16x128xbf16>
    %c0_1 = arith.constant 0 : index
    %c0_2 = arith.constant 0 : index
    %1 = vector.load %arg2[%c0_1, %c0_2] : memref<128x128xbf16, #tpu.memory_space<vmem>>, vector<128x128xbf16>
    %cst = arith.constant dense<0.000000e+00> : vector<16x128xf32>
    %2 = tpu.matmul %0, %1, %cst {dimension_numbers = #tpu.dot_dimension_numbers<[1], [0], [0], [1], [0, 0, 1, 1], [], []>} : vector<16x128xbf16>, vector<128x128xbf16>, vector<16x128xf32> -> vector<16x128xf32>
    %c0_3 = arith.constant 0 : index
    %c0_4 = arith.constant 0 : index
    %3 = vector.load %arg3[%c0_3, %c0_4] : memref<1x128xf32, #tpu.memory_space<vmem>>, vector<1x128xf32>
    %4 = vector.broadcast %3 : vector<1x128xf32> to vector<16x128xf32>
    %5 = arith.addf %2, %4 : vector<16x128xf32>
    %6 = math.tanh %5 : vector<16x128xf32>
    %7 = arith.extf %0 : vector<16x128xbf16> to vector<16x128xf32>
    %c64_i32 = arith.constant 64 : i32
    %8 = tpu.dynamic_rotate %7 by %c64_i32 dim 1 : vector<16x128xf32>, i32 -> vector<16x128xf32>
    %c0_5 = arith.constant 0 : index
    %c0_6 = arith.constant 0 : index
    %9 = vector.load %arg4[%c0_5, %c0_6] : memref<1x128xf32, #tpu.memory_space<vmem>>, vector<1x128xf32>
    %10 = vector.broadcast %9 : vector<1x128xf32> to vector<16x128xf32>
    %11 = arith.mulf %7, %10 : vector<16x128xf32>
    %12 = arith.mulf %7, %8 : vector<16x128xf32>
    %c0_7 = arith.constant 0 : index
    %c0_8 = arith.constant 0 : index
    %13 = vector.load %arg5[%c0_7, %c0_8] : memref<1x128xf32, #tpu.memory_space<vmem>>, vector<1x128xf32>
    %14 = vector.broadcast %13 : vector<1x128xf32> to vector<16x128xf32>
    %15 = arith.mulf %12, %14 : vector<16x128xf32>
    %16 = arith.addf %11, %15 : vector<16x128xf32>
    %cst_9 = arith.constant dense<0.000000e+00> : vector<16xf32>
    %17 = vector.multi_reduction <add>, %16, %cst_9 [1] : vector<16x128xf32> to vector<16xf32>
    %18 = vector.shape_cast %17 : vector<16xf32> to vector<16x1xf32>
    %c0_10 = arith.constant 0 : index
    %c0_11 = arith.constant 0 : index
    %19 = memref.load %arg6[%c0_10, %c0_11] : memref<1x1xf32, #tpu.memory_space<smem>>
    %20 = vector.broadcast %19 : f32 to vector<16x1xf32>
    %21 = arith.addf %18, %20 : vector<16x1xf32>
    %22 = arith.negf %21 : vector<16x1xf32>
    %23 = math.exp %22 : vector<16x1xf32>
    %cst_12 = arith.constant 1.000000e+00 : f32
    %24 = vector.broadcast %cst_12 : f32 to vector<16x1xf32>
    %25 = arith.addf %24, %23 : vector<16x1xf32>
    %26 = arith.divf %24, %25 : vector<16x1xf32>
    %c64_i32_13 = arith.constant 64 : i32
    %27 = tpu.dynamic_rotate %6 by %c64_i32_13 dim 1 : vector<16x128xf32>, i32 -> vector<16x128xf32>
    %28 = vector.broadcast %26 : vector<16x1xf32> to vector<16x128xf32>
    %29 = arith.mulf %28, %6 : vector<16x128xf32>
    %cst_14 = arith.constant 1.000000e+00 : f32
    %30 = vector.broadcast %cst_14 : f32 to vector<16x1xf32>
    %31 = arith.subf %30, %26 : vector<16x1xf32>
    %32 = vector.broadcast %31 : vector<16x1xf32> to vector<16x128xf32>
    %33 = arith.mulf %32, %27 : vector<16x128xf32>
    %34 = arith.addf %29, %33 : vector<16x128xf32>
    %35 = vector.extract_strided_slice %34 {offsets = [0, 0], sizes = [16, 64], strides = [1, 1]} : vector<16x128xf32> to vector<16x64xf32>
    %36 = arith.truncf %35 : vector<16x64xf32> to vector<16x64xbf16>
    %c0_15 = arith.constant 0 : index
    %c0_16 = arith.constant 0 : index
    %37 = vector.load %arg7[%c0_15, %c0_16] : memref<16x64xbf16, #tpu.memory_space<vmem>>, vector<16x64xbf16>
    tpu.vector_store %arg7[%c0_15, %c0_16], %36 {strides = array<i32>} : memref<16x64xbf16, #tpu.memory_space<vmem>>, vector<16x64xbf16>,
    return
  }
  func.func @transform_0(%arg0: i32) -> (i32, i32) {
    %c0_i32 = arith.constant 0 : i32
    %c0_i32_0 = arith.constant 0 : i32
    return %arg0, %c0_i32 : i32, i32
  }
  func.func @transform_1(%arg0: i32) -> (i32, i32) {
    %c0_i32 = arith.constant 0 : i32
    %c0_i32_0 = arith.constant 0 : i32
    %c0_i32_1 = arith.constant 0 : i32
    return %c0_i32, %c0_i32_0 : i32, i32
  }
  func.func @transform_2(%arg0: i32) -> (i32, i32) {
    %c0_i32 = arith.constant 0 : i32
    %c0_i32_0 = arith.constant 0 : i32
    %c0_i32_1 = arith.constant 0 : i32
    return %c0_i32, %c0_i32_0 : i32, i32
  }
  func.func @transform_3(%arg0: i32) -> (i32, i32) {
    %c0_i32 = arith.constant 0 : i32
    %c0_i32_0 = arith.constant 0 : i32
    %c0_i32_1 = arith.constant 0 : i32
    return %c0_i32, %c0_i32_0 : i32, i32
  }
  func.func @transform_4(%arg0: i32) -> (i32, i32) {
    %c0_i32 = arith.constant 0 : i32
    %c0_i32_0 = arith.constant 0 : i32
    %c0_i32_1 = arith.constant 0 : i32
    return %c0_i32, %c0_i32_0 : i32, i32
  }
  func.func @transform_5(%arg0: i32) -> (i32, i32) {
    %c0_i32 = arith.constant 0 : i32
    %c0_i32_0 = arith.constant 0 : i32
    %c0_i32_1 = arith.constant 0 : i32
    return %c0_i32, %c0_i32_0 : i32, i32
  }
  func.func @transform_6(%arg0: i32) -> (i32, i32) {
    %c0_i32 = arith.constant 0 : i32
    %c0_i32_0 = arith.constant 0 : i32
    return %arg0, %c0_i32 : i32, i32
  }
}

</mosaic_0001>

<bundles_post_ra>
// kernel: gated_attention_forward.1
= control target key start
LH: loop header
LB: loop body
LE: loop exit
PB: predicated region body
PF: predicated region fallthrough
CT: control target
= control target key end

     0   :  { %v336_v1 = vmov 0.0   ;;  %vm337_vm0 = vmmov 0   ;;  %s338_s27 = smov 64   ;;  %s423_s0 = inlined_call_operand.vmem [shape: bf16[16,128], index: 0, kind: input, shape index: {}]   ;;  %s424_s1 = inlined_call_operand.vmem [shape: bf16[128,128], index: 1, kind: input, shape index: {}]   ;;  %s425_s2 = inlined_call_operand.vmem [shape: f32[1,128], index: 2, kind: input, shape index: {}]   ;;  %s426_s3 = inlined_call_operand.vmem [shape: f32[1,128], index: 3, kind: input, shape index: {}]   ;;  %s427_s4 = inlined_call_operand.vmem [shape: f32[1,128], index: 4, kind: input, shape index: {}]   ;;  %s428_s5 = inlined_call_operand.<no memory space> [shape: f32[1,1], index: 5, kind: input, shape index: {}]   ;;  %s429_s6 = inlined_call_operand.hbm [shape: bf16[16,64], index: 6, kind: output, shape index: {}]  }
   0x1   :  { %v292_v0 = vld [vmem:[%s424_s1 + $0x38] sm:$0xff]   ;;  %262 = vmatprep.subr.bf16.mxu0 %v336_v1  ;;  %v26_v2 = vld [vmem:[%s423_s0] sm:$0xff]   ;;  %v293_v5 = vld [vmem:[%s424_s1 + $0x30] sm:$0xff]   ;;  %278 = vmatprep.mubr.msk.bf16.mxu0 %vm337_vm0, %v336_v1 }
   0x2   :  { %263 = vmatpush3.bf16.msra.mxu0 %v292_v0  ;;  %v148_v3 = vunpack.c.l.bf16 %v26_v2  ;;  %v149_v4 = vunpack.c.h.bf16 %v26_v2  ;;  %v294_v7 = vld [vmem:[%s424_s1 + $0x28] sm:$0xff]  }
   0x3   :  { %264 = vmatprep.subr.bf16.mxu0 %v336_v1 }
   0x4   :  { %v287_v6 = vpack.i.bf16 %v149_v4, %v148_v3 }
   0x6   :  { %288 = vrot.lane.b32.xlu0 %v287_v6, %s338_s27  ;;  %265 = vmatpush3.bf16.msra.mxu0 %v293_v5 }
   0x7   :  { %266 = vmatprep.subr.bf16.mxu0 %v336_v1 }
   0x8   :  { %12 = vsyncpa [#allocation4], 0  ;;  %v295_v8 = vld [vmem:[%s424_s1 + $0x20] sm:$0xff]   ;;  %v296_v9 = vld [vmem:[%s424_s1 + $0x18] sm:$0xff]   ;;  %v181_v35 = vstv %s428_s5  ;;  %vm216_vm1 = vcmask 519168  }
   0x9   :  { %v297_v10 = vld [vmem:[%s424_s1 + $0x10] sm:$0xff]   ;;  %v298_v11 = vld [vmem:[%s424_s1 + $0x8] sm:$0xff]   ;;  %v299_v12 = vld [vmem:[%s424_s1] sm:$0xff]  }
   0xa   :  { %267 = vmatpush3.bf16.msra.mxu0 %v294_v7  ;;  %v245_v14 = vld [vmem:[%s426_s3] ss:$0 sm:$0xff] }
   0xb   :  { %268 = vmatprep.subr.bf16.mxu0 %v336_v1  ;;  %v246_v17 = vld [vmem:[%s427_s4] ss:$0 sm:$0xff]  ;;  %v162_v20 = vmul.f32 %v245_v14, %v149_v4  ;;  %v161_v21 = vmul.f32 %v245_v14, %v148_v3 }
   0xc   :  { %v235_v26 = vld [vmem:[%s425_s2] ss:$0 sm:$0xff]  ;;  %s339_s2 = smov [#allocation3]  }
   0xd   :  { %s224_s5 = sshll.u32 %s339_s2, 4  ;;  %s225_s5 = int_to_ptr.vmem [resolvable:$true] %s224_s5 }
   0xe   :  { %269 = vmatpush3.bf16.msra.mxu0 %v295_v8  ;;  %s314_s20 = scalar_lea.vmem %s225_s5, 128  ;;  %p319_p1 = scmp.lt.s32.totalorder %s225_s5, %s225_s5 }
   0xf   :  { %270 = vmatprep.subr.bf16.mxu0 %v336_v1  ;;  %p315_p0 = scmp.ne.s32.totalorder %s225_s5, %s314_s20  ;;  %p320_p2 = scmp.lt.s32.totalorder %s314_s20, %s314_s20 }
  0x11   :  { %p321_p3 = por %p320_p2, %p319_p1 }
  0x12   :  { %271 = vmatpush3.bf16.msra.mxu0 %v296_v9 }
  0x13   :  { %272 = vmatprep.subr.bf16.mxu0 %v336_v1  ;;  %p322_p4 = pnand %p321_p3, %p315_p0 }
  0x16   :  { %273 = vmatpush3.bf16.msra.mxu0 %v297_v10 }
  0x17   :  { %274 = vmatprep.subr.bf16.mxu0 %v336_v1 }
  0x1a   :  { %275 = vmatpush3.bf16.msra.mxu0 %v298_v11 }
  0x1b   :  { %276 = vmatprep.subr.bf16.mxu0 %v336_v1 }
  0x1e   :  { %277 = vmatpush3.bf16.msra.mxu0 %v299_v12 }
  0x21   :  { %279 = vmatmul.mubr.bf16.vlgmr.msra.gmra.mxu0 %v26_v2 }
  0x78   :  { %v289_v13 = vpop.permute.xlu0 %288 }
  0x79   :  { %v291_v15 = vunpack.i.h.bf16 %v289_v13  ;;  %v290_v16 = vunpack.i.l.bf16 %v289_v13 }
  0x7b   :  { %v164_v18 = vmul.f32 %v291_v15, %v149_v4  ;;  %v163_v19 = vmul.f32 %v290_v16, %v148_v3 }
  0x7d   :  { %v173_v22 = vmul.f32 %v246_v17, %v164_v18  ;;  %v172_v23 = vmul.f32 %v246_v17, %v163_v19 }
  0x7f   :  { %v175_v24 = vadd.f32 %v173_v22, %v162_v20  ;;  %v174_v25 = vadd.f32 %v172_v23, %v161_v21 }
  0x81   :  { %178 = vadd.xlane.f32.xlu1 %v175_v24  ;;  %176 = vadd.xlane.f32.xlu0 %v174_v25 }
  0xe1   :  { %v139_v27 = vpop.f32.mrf.mxu0 }
  0xe2   :  { %v140_v28 = vadd.f32 %v235_v26, %v139_v27 }
  0xe3   :  { %v280_v29 = vpop.f32.mrf.mxu0 }
  0xe4   :  { %302 = vtanh.f32 %v140_v28 }
  0xe5   :  { %v142_v30 = vpop.f32.mrf.mxu0 }
  0xe6   :  { %v143_v31 = vadd.f32 %v235_v26, %v142_v30 }
  0xe7   :  { %v281_v32 = vpop.f32.mrf.mxu0 }
  0xe8   :  { %304 = vtanh.f32 %v143_v31 }
  0xf1   :  { %v303_v33 = vpop.eup %302 }
  0xf2   :  { %196 = vrot.lane.b32.xlu1 %v303_v33, %s338_s27 }
  0xf5   :  { %v305_v34 = vpop.eup %304 }
  0xf6   :  { %198 = vrot.lane.b32.xlu1 %v305_v34, %s338_s27 }
 0x10a   :  { %v177_v36 = vpop.xlane.xlu0 %176  ;;  %v179_v38 = vpop.xlane.xlu1 %178 }
 0x10b   :  { %v182_v37 = vadd.f32 %v181_v35, %v177_v36  ;;  %v183_v39 = vadd.f32 %v181_v35, %v179_v38 }
 0x10d   :  { %v247_v40 = vmul.f32 -1.442695, %v182_v37  ;;  %v248_v41 = vmul.f32 -1.442695, %v183_v39 }
 0x10f   :  { %306 = vpow2.f32 %v247_v40 }
 0x110   :  { %308 = vpow2.f32 %v248_v41 }
 0x11c   :  { %v307_v42 = vpop.eup %306 }
 0x11d   :  { %v190_v43 = vadd.f32 1.0, %v307_v42  ;;  %v309_v44 = vpop.eup %308 }
 0x11e   :  { %v191_v45 = vadd.f32 1.0, %v309_v44 }
 0x11f   :  { %310 = vrcp.f32 %v190_v43 }
 0x120   :  { %312 = vrcp.f32 %v191_v45 }
 0x12c   :  { %v311_v46 = vpop.eup %310 }
 0x12d   :  { %v202_v47 = vsub.f32 1.0, %v311_v46  ;;  %v313_v48 = vpop.eup %312  ;;  %v200_v50 = vmul.f32 %v311_v46, %v303_v33 }
 0x12e   :  { %v203_v52 = vsub.f32 1.0, %v313_v48  ;;  %v201_v56 = vmul.f32 %v313_v48, %v305_v34 }
 0x164   :  { %v197_v49 = vpop.permute.xlu1 %196 }
 0x165   :  { %v204_v51 = vmul.f32 %v202_v47, %v197_v49 }
 0x167   :  { %v206_v53 = vadd.f32 %v204_v51, %v200_v50 }
 0x168   :  { %v199_v54 = vpop.permute.xlu1 %198 }
 0x169   :  { %v251_v55 = vpack.c.bf16 %v206_v53, %v206_v53  ;;  %v205_v57 = vmul.f32 %v203_v52, %v199_v54 }
 0x16b   :  { %217 = vst.msk [vmem:[#allocation3] sm:$0xf] %vm216_vm1, %v251_v55  ;;  %v207_v58 = vadd.f32 %v205_v57, %v201_v56 }
 0x16d   :  { %v252_v59 = vpack.c.bf16 %v207_v58, %v207_v58 }
 0x16f   :  { %218 = vst.msk [vmem:[#allocation3 + $0x4] sm:$0xf] %vm216_vm1, %v252_v59 }
 0x170   :  { %325 = shalt.err (!%p322_p4)
}
 0x171   :  { %s340_s21 = smov 4  }
 0x172   :  { %230 = dma.vmem_to_hbm [thread:$0]  %s225_s5, 128, %s429_s6, [#allocation4], %s338_s27, %s338_s27, %s340_s21  }
 0x173   :  { %334 = dma.done.wait [#allocation4], 128  }
 0x174   :  { %335 = vsyncadd [#allocation4], 4294967168 }
 0x175   :  { %234 = vsyncpa [#allocation4], 1 }

</bundles_post_ra>
